<compile_context>
chip_gen: v7x
topology: tpu7x:2x2x1
jax: 0.10.0
libtpu: 0.0.40
codegen_flags: <defaults>
</compile_context>

<pallas_src>
import functools

import jax
import jax.numpy as jnp
from jax.experimental import pallas as pl
from jax.experimental.pallas import tpu as pltpu


def _ce_kernel(logits_ref, labels_ref, loss_ref, *, n_true):
    # logits_ref: (TILE_N, C)  input dtype, VMEM
    # labels_ref: (TILE_N, 1)  int32, VMEM
    # loss_ref  : (TILE_N, 1)  float32 per-example loss (padded rows -> 0)
    i = pl.program_id(0)
    logits = logits_ref[...].astype(jnp.float32)               # (T, C) f32 compute
    labels = labels_ref[...]                                   # (T, 1) int32
    t, c = logits.shape

    # Numerically-stable log-sum-exp along the class axis (XLU reduce + EUP exp).
    m = jnp.max(logits, axis=-1, keepdims=True)                # (T, 1)
    shifted = logits - m
    sumexp = jnp.sum(jnp.exp(shifted), axis=-1, keepdims=True)  # (T, 1)

    # One-hot pick of the true-class logit in the shifted domain:
    #   lse - picked = log(sumexp) + m - picked = log(sumexp) - (picked - m)
    cols = jax.lax.broadcasted_iota(jnp.int32, (t, c), 1)
    picked_shifted = jnp.sum(jnp.where(cols == labels, shifted, 0.0),
                             axis=-1, keepdims=True)           # (T, 1)
    per_example = jnp.log(sumexp) - picked_shifted             # (T, 1)

    # Mask rows that are pure padding (N not a multiple of TILE_N).
    rows = jax.lax.broadcasted_iota(jnp.int32, (t, 1), 0) + i * t
    loss_ref[...] = jnp.where(rows < n_true, per_example, 0.0)


def _choose_tile_n(n, c, itemsize):
    # VMEM bytes per batch row: logits row + lane-padded (.,1) label row +
    # lane-padded (.,1) output row.  Target ~4 MiB per buffered window so the
    # double-buffered total (~8 MiB) stays well inside v7x's 32 MiB scoped VMEM.
    per_row = c * itemsize + 128 * 4 + 128 * 4
    target = 4 * 1024 * 1024
    tile = max(8, (target // per_row) // 8 * 8)
    n_pad8 = ((n + 7) // 8) * 8
    return int(min(tile, n_pad8))


def cross_entropy_loss_pallas(y_pre, y_true, *, tile_n=None):
    """Mean-reduced cross entropy.  y_pre: [N, C] float, y_true: [N] int."""
    n, c = y_pre.shape
    itemsize = jnp.dtype(y_pre.dtype).itemsize
    if tile_n is None:
        tile_n = _choose_tile_n(n, c, itemsize)
    tile_n = max(8, (int(tile_n) // 8) * 8)

    num_tiles = pl.cdiv(n, tile_n)
    n_pad = num_tiles * tile_n

    logits = y_pre                                     # keep original dtype in HBM
    labels = y_true.astype(jnp.int32).reshape(n, 1)
    if n_pad != n:
        logits = jnp.pad(logits, ((0, n_pad - n), (0, 0)))
        labels = jnp.pad(labels, ((0, n_pad - n), (0, 0)))

    per_example = pl.pallas_call(
        functools.partial(_ce_kernel, n_true=n),
        out_shape=jax.ShapeDtypeStruct((n_pad, 1), jnp.float32),
        grid=(num_tiles,),
        in_specs=[
            pl.BlockSpec((tile_n, c), lambda i: (i, 0)),   # logits tile
            pl.BlockSpec((tile_n, 1), lambda i: (i, 0)),   # labels tile
        ],
        out_specs=pl.BlockSpec((tile_n, 1), lambda i: (i, 0)),
        compiler_params=pltpu.CompilerParams(
            dimension_semantics=("parallel",),   # disjoint outputs -> both TCs on v7x
            vmem_limit_bytes=32 * 1024 * 1024,
        ),
    )(logits, labels)

    # Tiny final reduction (padded rows are already zeroed in-kernel).
    return jnp.sum(per_example) / n
    # TODO(synk): online logsumexp over C-tiles if C ever approaches vocab scale.


class Myloss:
    """Mirrors the PyTorch Myloss module (forward computes CE then returns None)."""

    def forward(self, y_pre, y_true):
        _ = cross_entropy_loss_pallas(y_pre, y_true)
        return  # faithful to the original: bare `return` -> None

    __call__ = forward


def _reference_ce(y_pre, y_true):
    logits = y_pre.astype(jnp.float32)
    labels = y_true.astype(jnp.int32)
    logp = jax.nn.log_softmax(logits, axis=-1)
    nll = -jnp.take_along_axis(logp, labels[:, None], axis=-1)[:, 0]
    return jnp.mean(nll)


if __name__ == "__main__":
    key = jax.random.PRNGKey(0)
    k1, k2, k3, k4 = jax.random.split(key, 4)

    # Test 1: small batch, single tile.
    N, C = 8, 32
    y_pre = jax.random.normal(k1, (N, C), dtype=jnp.float32)
    y_true = jax.random.randint(k2, (N,), 0, C, dtype=jnp.int32)
    loss = jax.block_until_ready(cross_entropy_loss_pallas(y_pre, y_true))
    ref = _reference_ce(y_pre, y_true)
    assert jnp.allclose(loss, ref, atol=1e-5, rtol=1e-5), (loss, ref)

    # Test 2: multi-tile grid with padding/masking (N not a multiple of tile).
    N2, C2 = 50, 32
    y_pre2 = jax.random.normal(k3, (N2, C2), dtype=jnp.float32)
    y_true2 = jax.random.randint(k4, (N2,), 0, C2, dtype=jnp.int32)
    loss2 = jax.block_until_ready(
        cross_entropy_loss_pallas(y_pre2, y_true2, tile_n=16))
    ref2 = _reference_ce(y_pre2, y_true2)
    assert jnp.allclose(loss2, ref2, atol=1e-5, rtol=1e-5), (loss2, ref2)

    # Test 3: bf16 logits (original-dtype DMA path).
    y_pre3 = y_pre2.astype(jnp.bfloat16)
    loss3 = jax.block_until_ready(cross_entropy_loss_pallas(y_pre3, y_true2))
    ref3 = _reference_ce(y_pre3, y_true2)
    assert jnp.allclose(loss3, ref3, atol=2e-2, rtol=2e-2), (loss3, ref3)

    # Module-style call (returns None, like the PyTorch original).
    out = Myloss().forward(y_pre, y_true)
    assert out is None

    print("KERNEL_OK")
</pallas_src>

<mosaic_0001>
module attributes {stable_mosaic.version = 11 : i64} {
  func.func @_ce_kernel(%arg0: i32, %arg1: memref<8x32xf32, #tpu.memory_space<vmem>>, %arg2: memref<8x1xi32, #tpu.memory_space<vmem>>, %arg3: memref<8x1xf32, #tpu.memory_space<vmem>>) attributes {dimension_semantics = [#tpu.dimension_semantics<parallel>], iteration_bounds = array<i64: 1>, scalar_prefetch = 0 : i64, scratch_operands = 0 : i64, tpu.core_type = #tpu.core_type<tc>, window_params = [{transform_indices = @transform_0, window_bounds = array<i64: 8, 32>}, {transform_indices = @transform_1, window_bounds = array<i64: 8, 1>}, {transform_indices = @transform_2, window_bounds = array<i64: 8, 1>}]} {
    %c0 = arith.constant 0 : index
    %c0_0 = arith.constant 0 : index
    %0 = vector.load %arg1[%c0, %c0_0] : memref<8x32xf32, #tpu.memory_space<vmem>>, vector<8x32xf32>
    %c0_1 = arith.constant 0 : index
    %c0_2 = arith.constant 0 : index
    %1 = vector.load %arg2[%c0_1, %c0_2] : memref<8x1xi32, #tpu.memory_space<vmem>>, vector<8x1xi32>
    %cst = arith.constant dense<0xFF800000> : vector<8xf32>
    %2 = vector.multi_reduction <maximumf>, %0, %cst [1] : vector<8x32xf32> to vector<8xf32>
    %3 = vector.shape_cast %2 : vector<8xf32> to vector<8x1xf32>
    %4 = vector.broadcast %3 : vector<8x1xf32> to vector<8x32xf32>
    %5 = arith.subf %0, %4 : vector<8x32xf32>
    %6 = math.exp %5 : vector<8x32xf32>
    %cst_3 = arith.constant dense<0.000000e+00> : vector<8xf32>
    %7 = vector.multi_reduction <add>, %6, %cst_3 [1] : vector<8x32xf32> to vector<8xf32>
    %8 = vector.shape_cast %7 : vector<8xf32> to vector<8x1xf32>
    %9 = tpu.iota {dimensions = array<i32: 1>} : vector<8x32xi32>
    %10 = vector.broadcast %1 : vector<8x1xi32> to vector<8x32xi32>
    %11 = arith.cmpi eq, %9, %10 : vector<8x32xi32>
    %cst_4 = arith.constant 0.000000e+00 : f32
    %12 = vector.broadcast %cst_4 : f32 to vector<8x32xf32>
    %13 = arith.select %11, %5, %12 : vector<8x32xi1>, vector<8x32xf32>
    %cst_5 = arith.constant dense<0.000000e+00> : vector<8xf32>
    %14 = vector.multi_reduction <add>, %13, %cst_5 [1] : vector<8x32xf32> to vector<8xf32>
    %15 = vector.shape_cast %14 : vector<8xf32> to vector<8x1xf32>
    %16 = math.log %8 : vector<8x1xf32>
    %17 = arith.subf %16, %15 : vector<8x1xf32>
    %18 = tpu.iota {dimensions = array<i32: 0>} : vector<8x1xi32>
    %c8_i32 = arith.constant 8 : i32
    %19 = arith.muli %arg0, %c8_i32 : i32
    %20 = vector.broadcast %19 : i32 to vector<8x1xi32>
    %21 = arith.addi %18, %20 : vector<8x1xi32>
    %c8_i32_6 = arith.constant 8 : i32
    %22 = vector.broadcast %c8_i32_6 : i32 to vector<8x1xi32>
    %23 = arith.cmpi slt, %21, %22 : vector<8x1xi32>
    %cst_7 = arith.constant 0.000000e+00 : f32
    %24 = vector.broadcast %cst_7 : f32 to vector<8x1xf32>
    %25 = arith.select %23, %17, %24 : vector<8x1xi1>, vector<8x1xf32>
    %c0_8 = arith.constant 0 : index
    %c0_9 = arith.constant 0 : index
    %26 = vector.load %arg3[%c0_8, %c0_9] : memref<8x1xf32, #tpu.memory_space<vmem>>, vector<8x1xf32>
    tpu.vector_store %arg3[%c0_8, %c0_9], %25 {strides = array<i32>} : memref<8x1xf32, #tpu.memory_space<vmem>>, vector<8x1xf32>,
    return
  }
  func.func @transform_0(%arg0: i32) -> (i32, i32) {
    %c0_i32 = arith.constant 0 : i32
    %c0_i32_0 = arith.constant 0 : i32
    return %arg0, %c0_i32 : i32, i32
  }
  func.func @transform_1(%arg0: i32) -> (i32, i32) {
    %c0_i32 = arith.constant 0 : i32
    %c0_i32_0 = arith.constant 0 : i32
    return %arg0, %c0_i32 : i32, i32
  }
  func.func @transform_2(%arg0: i32) -> (i32, i32) {
    %c0_i32 = arith.constant 0 : i32
    %c0_i32_0 = arith.constant 0 : i32
    return %arg0, %c0_i32 : i32, i32
  }
}

</mosaic_0001>

<bundles_post_ra>
// kernel: tpu_custom_call.1
= control target key start
LH: loop header
LB: loop body
LE: loop exit
PB: predicated region body
PF: predicated region fallthrough
CT: control target
= control target key end

     0   :  { %vm13_vm0 = vcmask 261120   ;;  %v55_v1 = vmov 0   ;;  %v23_v7 = vlaneseq  ;;  %vm43_vm2 = vcmask 7168   ;;  %s83_s0 = inlined_call_operand.vmem [shape: f32[8,32], index: 0, kind: input, shape index: {}]   ;;  %s84_s1 = inlined_call_operand.vmem [shape: s32[8,1], index: 1, kind: input, shape index: {}]   ;;  %s85_s2 = inlined_call_operand.vmem [shape: f32[8,1], index: 2, kind: output, shape index: {}]  }
   0x1   :  { %v11_v0 = vld [vmem:[%s83_s0] sm:$0xff]  ;;  %50 = vset.pattern.permute.xlu0 %v55_v1 }
   0x2   :  { %v14_v2 = vsel %vm13_vm0, %v11_v0, -inf  ;;  %v12_v3 = vld [vmem:[%s84_s1] sm:$0xff]  ;;  %v24_v8 = vand.u32 127, %v23_v7 }
   0x3   :  { %15 = vmax.xlane.f32.xlu0 %v14_v2 }
  0x19   :  { %26 = vperm.xlu0 %50, %v12_v3  }
  0x90   :  { %v16_v4 = vpop.xlane.xlu0 %15 }
  0x91   :  { %v17_v5 = vsub.f32 %v11_v0, %v16_v4 }
  0x93   :  { %v18_v6 = vmul.f32 1.442695, %v17_v5 }
  0x95   :  { %51 = vpow2.f32 %v18_v6 }
  0x98   :  { %v27_v9 = vpop.permute.xlu0 %26 }
  0x99   :  { %vm28_vm1 = vcmp.eq.s32.totalorder %v24_v8, %v27_v9 }
  0x9a   :  { %v29_v12 = vsel %vm28_vm1, %v17_v5, 0.0 }
  0x9b   :  { %v30_v13 = vsel %vm13_vm0, %v29_v12, 0.0 }
  0x9f   :  { %v52_v10 = vpop.eup %51 }
  0xa0   :  { %v20_v11 = vsel %vm13_vm0, %v52_v10, 0.0 }
  0xa1   :  { %21 = vadd.xlane.f32.xlu1 %v20_v11 }
  0xa5   :  { %31 = vadd.xlane.f32.xlu1 %v30_v13 }
 0x12e   :  { %v22_v14 = vpop.xlane.xlu1 %21 }
 0x12f   :  { %53 = vlog2.f32 %v22_v14 }
 0x132   :  { %v32_v17 = vpop.xlane.xlu1 %31 }
 0x139   :  { %v54_v15 = vpop.eup %53 }
 0x13a   :  { %v34_v16 = vmul.f32 0.6931472, %v54_v15 }
 0x13c   :  { %v35_v18 = vsub.f32 %v34_v16, %v32_v17 }
 0x13e   :  { %44 = vst.msk [vmem:[%s85_s2] sm:$0xff] %vm43_vm2, %v35_v18 }

</bundles_post_ra>
